<compile_context>
chip_gen: v5e
topology: v5e:2x2
jax: 0.10.0
libtpu: 0.0.40
codegen_flags: <defaults>
</compile_context>

<pallas_src>
import functools

import jax
import jax.numpy as jnp
from jax.experimental import pallas as pl
from jax.experimental.pallas import tpu as pltpu


def _round_up(x: int, m: int) -> int:
    return ((x + m - 1) // m) * m


# --------------------------------------------------------------------------- #
# Kernel: fused multi-layer (Linear + folded-BN affine + optional ReLU) chain. #
# --------------------------------------------------------------------------- #
def _fused_mlp_kernel(*refs, num_layers: int, relu_flags: tuple):
    # refs = (x_ref, wt0, aff0, wt1, aff1, ..., o_ref)
    #   x_ref:  (tb, K0p)  f32   padded input batch tile
    #   wt_l:   (Klp, Nlp) bf16  padded W^T for layer l (VMEM-resident)
    #   aff_l:  (2,  Nlp)  f32   row 0 = folded BN scale, row 1 = folded shift
    #   o_ref:  (tb, NLp)  f32   padded output batch tile
    x_ref = refs[0]
    o_ref = refs[1 + 2 * num_layers]

    h = x_ref[...].astype(jnp.float32)
    for l in range(num_layers):
        wt_ref = refs[1 + 2 * l]
        aff_ref = refs[2 + 2 * l]
        # MXU matmul in bf16 with f32 accumulation.
        y = jnp.dot(h.astype(jnp.bfloat16), wt_ref[...],
                    preferred_element_type=jnp.float32)
        scale = aff_ref[0:1, :]
        shift = aff_ref[1:2, :]
        y = y * scale + shift
        if relu_flags[l]:
            y = jnp.maximum(y, 0.0)
        h = y  # padded columns stay exactly 0 -> safe to chain without slicing
    o_ref[...] = h.astype(o_ref.dtype)


# --------------------------------------------------------------------------- #
# Setup-time weight preparation (hoisted out of the forward path).             #
# --------------------------------------------------------------------------- #
def prepare_mlp_params(layers):
    """layers: list of dicts with keys
         w (N,K), b (N,), bn = (gamma,beta,mean,var,eps) or None, relu (bool).
       Returns padded, BN-folded, bf16-cast parameters (done once)."""
    prepared = []
    for layer in layers:
        w, b = layer["w"], layer["b"]
        N, K = w.shape
        Kp, Np = _round_up(K, 128), _round_up(N, 128)

        if layer["bn"] is not None:
            gamma, beta, mean, var, eps = layer["bn"]
            scale = gamma / jnp.sqrt(var + eps)
            shift = (b - mean) * scale + beta
        else:
            scale = jnp.ones_like(b)
            shift = b

        wt_p = jnp.zeros((Kp, Np), jnp.bfloat16).at[:K, :N].set(
            w.T.astype(jnp.bfloat16))
        aff_p = jnp.zeros((2, Np), jnp.float32)
        aff_p = aff_p.at[0, :N].set(scale.astype(jnp.float32))
        aff_p = aff_p.at[1, :N].set(shift.astype(jnp.float32))

        prepared.append(dict(wt=wt_p, aff=aff_p, relu=bool(layer["relu"]),
                             K=K, N=N, Kp=Kp, Np=Np))
    return prepared


# --------------------------------------------------------------------------- #
# Forward: one pallas_call for the whole MLP.                                   #
# --------------------------------------------------------------------------- #
def mlp_base_forward(x, prepared):
    B, K0 = x.shape
    assert K0 == prepared[0]["K"]
    K0p = prepared[0]["Kp"]
    N_last, N_last_p = prepared[-1]["N"], prepared[-1]["Np"]

    # Batch tile: multiple of 8 sublanes, capped at 256 rows (MXU-friendly on
    # v6e/v7x, still fine on v5e); only the batch needs padding per call.
    tb = min(256, _round_up(B, 8))
    Bp = _round_up(B, tb)
    x_p = jnp.zeros((Bp, K0p), jnp.float32).at[:B, :K0].set(
        x.astype(jnp.float32))

    num_layers = len(prepared)
    relu_flags = tuple(p["relu"] for p in prepared)

    in_specs = [pl.BlockSpec((tb, K0p), lambda i: (i, 0))]
    inputs = [x_p]
    for p in prepared:
        Kp, Np = p["Kp"], p["Np"]
        # Constant block index across batch tiles -> weights stay VMEM-resident.
        in_specs.append(pl.BlockSpec((Kp, Np), lambda i: (0, 0)))
        in_specs.append(pl.BlockSpec((2, Np), lambda i: (0, 0)))
        inputs.append(p["wt"])
        inputs.append(p["aff"])

    out = pl.pallas_call(
        functools.partial(_fused_mlp_kernel,
                          num_layers=num_layers, relu_flags=relu_flags),
        out_shape=jax.ShapeDtypeStruct((Bp, N_last_p), jnp.float32),
        grid_spec=pltpu.PrefetchScalarGridSpec(
            num_scalar_prefetch=0,
            grid=(Bp // tb,),
            in_specs=in_specs,
            out_specs=pl.BlockSpec((tb, N_last_p), lambda i: (i, 0)),
        ),
        compiler_params=pltpu.CompilerParams(
            dimension_semantics=("parallel",)),
    )(*inputs)
    return out[:B, :N_last]


# --------------------------------------------------------------------------- #
# Pure-JAX (unfused) reference of the eval-mode PyTorch forward.                #
# --------------------------------------------------------------------------- #
def mlp_base_ref(x, layers):
    h = x
    for layer in layers:
        z = h @ layer["w"].T + layer["b"]
        if layer["bn"] is not None:
            gamma, beta, mean, var, eps = layer["bn"]
            z = (z - mean) / jnp.sqrt(var + eps) * gamma + beta
        if layer["relu"]:
            z = jnp.maximum(z, 0.0)
        h = z  # dropout = identity in eval mode
    return h


if __name__ == "__main__":
    # MLP_Base(input_dim=32, embed_dims=[64, 32], batchnorm=True, dropout=0.2,
    #          output_layer=True), eval-mode forward, batch=16.
    input_dim = 32
    embed_dims = [64, 32]
    batch = 16
    eps = 1e-5

    key = jax.random.PRNGKey(0)

    layers = []
    in_dim = input_dim
    for out_dim in embed_dims:
        key, kw, km, kv = jax.random.split(key, 4)
        bound = (6.0 / (in_dim + out_dim)) ** 0.5           # xavier_uniform_
        w = jax.random.uniform(kw, (out_dim, in_dim), jnp.float32, -bound, bound)
        b = jnp.zeros((out_dim,), jnp.float32)              # constant_(bias, 0)
        # BatchNorm1d: weight=1, bias=0 per _initialize_weights; use non-trivial
        # "trained" running stats so the folded scale/shift path is exercised.
        gamma = jnp.ones((out_dim,), jnp.float32)
        beta = jnp.zeros((out_dim,), jnp.float32)
        running_mean = 0.1 * jax.random.normal(km, (out_dim,), jnp.float32)
        running_var = jax.random.uniform(kv, (out_dim,), jnp.float32, 0.5, 1.5)
        layers.append(dict(w=w, b=b,
                           bn=(gamma, beta, running_mean, running_var, eps),
                           relu=True))
        in_dim = out_dim

    # output_layer=True: final Linear(in_dim, 1), no BN / ReLU / dropout.
    key, kw = jax.random.split(key)
    bound = (6.0 / (in_dim + 1)) ** 0.5
    w_out = jax.random.uniform(kw, (1, in_dim), jnp.float32, -bound, bound)
    layers.append(dict(w=w_out, b=jnp.zeros((1,), jnp.float32), bn=None, relu=False))

    key, kx = jax.random.split(key)
    x = jax.random.normal(kx, (batch, input_dim), jnp.float32)

    # Setup-time prep (padding / transpose / BN fold / bf16 cast) done once.
    prepared = prepare_mlp_params(layers)

    out = mlp_base_forward(x, prepared)
    out = jax.block_until_ready(out)

    ref = mlp_base_ref(x, layers)
    assert out.shape == (batch, 1), out.shape
    # Tolerance covers bf16 MXU operands (f32 accumulation) vs. the f32 XLA
    # reference; at these magnitudes the observed error is well below this.
    assert jnp.allclose(out, ref, atol=2e-2, rtol=2e-2), (out, ref)

    print("KERNEL_OK")
</pallas_src>

<mosaic_0001>
module attributes {stable_mosaic.version = 11 : i64} {
  func.func @_fused_mlp_kernel(%arg0: i32, %arg1: memref<16x128xf32, #tpu.memory_space<vmem>>, %arg2: memref<128x128xbf16, #tpu.memory_space<vmem>>, %arg3: memref<2x128xf32, #tpu.memory_space<vmem>>, %arg4: memref<128x128xbf16, #tpu.memory_space<vmem>>, %arg5: memref<2x128xf32, #tpu.memory_space<vmem>>, %arg6: memref<128x128xbf16, #tpu.memory_space<vmem>>, %arg7: memref<2x128xf32, #tpu.memory_space<vmem>>, %arg8: memref<16x128xf32, #tpu.memory_space<vmem>>) attributes {dimension_semantics = [#tpu.dimension_semantics<parallel>], iteration_bounds = array<i64: 1>, scalar_prefetch = 0 : i64, scratch_operands = 0 : i64, tpu.core_type = #tpu.core_type<tc>, window_params = [{transform_indices = @transform_0, window_bounds = array<i64: 16, 128>}, {pipeline_mode = #tpu.pipeline_mode<synchronous>, transform_indices = @transform_1, window_bounds = array<i64: 128, 128>}, {pipeline_mode = #tpu.pipeline_mode<synchronous>, transform_indices = @transform_2, window_bounds = array<i64: 2, 128>}, {pipeline_mode = #tpu.pipeline_mode<synchronous>, transform_indices = @transform_3, window_bounds = array<i64: 128, 128>}, {pipeline_mode = #tpu.pipeline_mode<synchronous>, transform_indices = @transform_4, window_bounds = array<i64: 2, 128>}, {pipeline_mode = #tpu.pipeline_mode<synchronous>, transform_indices = @transform_5, window_bounds = array<i64: 128, 128>}, {pipeline_mode = #tpu.pipeline_mode<synchronous>, transform_indices = @transform_6, window_bounds = array<i64: 2, 128>}, {transform_indices = @transform_7, window_bounds = array<i64: 16, 128>}]} {
    %c0 = arith.constant 0 : index
    %c0_0 = arith.constant 0 : index
    %0 = vector.load %arg1[%c0, %c0_0] : memref<16x128xf32, #tpu.memory_space<vmem>>, vector<16x128xf32>
    %1 = arith.truncf %0 : vector<16x128xf32> to vector<16x128xbf16>
    %c0_1 = arith.constant 0 : index
    %c0_2 = arith.constant 0 : index
    %2 = vector.load %arg2[%c0_1, %c0_2] : memref<128x128xbf16, #tpu.memory_space<vmem>>, vector<128x128xbf16>
    %cst = arith.constant dense<0.000000e+00> : vector<16x128xf32>
    %3 = tpu.matmul %1, %2, %cst {dimension_numbers = #tpu.dot_dimension_numbers<[1], [0], [0], [1], [0, 0, 1, 1], [], []>} : vector<16x128xbf16>, vector<128x128xbf16>, vector<16x128xf32> -> vector<16x128xf32>
    %c0_3 = arith.constant 0 : index
    %c0_4 = arith.constant 0 : index
    %4 = vector.load %arg3[%c0_3, %c0_4] : memref<2x128xf32, #tpu.memory_space<vmem>>, vector<1x128xf32>
    %c1 = arith.constant 1 : index
    %c0_5 = arith.constant 0 : index
    %5 = vector.load %arg3[%c1, %c0_5] : memref<2x128xf32, #tpu.memory_space<vmem>>, vector<1x128xf32>
    %6 = vector.broadcast %4 : vector<1x128xf32> to vector<16x128xf32>
    %7 = arith.mulf %3, %6 : vector<16x128xf32>
    %8 = vector.broadcast %5 : vector<1x128xf32> to vector<16x128xf32>
    %9 = arith.addf %7, %8 : vector<16x128xf32>
    %cst_6 = arith.constant 0.000000e+00 : f32
    %10 = vector.broadcast %cst_6 : f32 to vector<16x128xf32>
    %11 = arith.maximumf %9, %10 : vector<16x128xf32>
    %12 = arith.truncf %11 : vector<16x128xf32> to vector<16x128xbf16>
    %c0_7 = arith.constant 0 : index
    %c0_8 = arith.constant 0 : index
    %13 = vector.load %arg4[%c0_7, %c0_8] : memref<128x128xbf16, #tpu.memory_space<vmem>>, vector<128x128xbf16>
    %cst_9 = arith.constant dense<0.000000e+00> : vector<16x128xf32>
    %14 = tpu.matmul %12, %13, %cst_9 {dimension_numbers = #tpu.dot_dimension_numbers<[1], [0], [0], [1], [0, 0, 1, 1], [], []>} : vector<16x128xbf16>, vector<128x128xbf16>, vector<16x128xf32> -> vector<16x128xf32>
    %c0_10 = arith.constant 0 : index
    %c0_11 = arith.constant 0 : index
    %15 = vector.load %arg5[%c0_10, %c0_11] : memref<2x128xf32, #tpu.memory_space<vmem>>, vector<1x128xf32>
    %c1_12 = arith.constant 1 : index
    %c0_13 = arith.constant 0 : index
    %16 = vector.load %arg5[%c1_12, %c0_13] : memref<2x128xf32, #tpu.memory_space<vmem>>, vector<1x128xf32>
    %17 = vector.broadcast %15 : vector<1x128xf32> to vector<16x128xf32>
    %18 = arith.mulf %14, %17 : vector<16x128xf32>
    %19 = vector.broadcast %16 : vector<1x128xf32> to vector<16x128xf32>
    %20 = arith.addf %18, %19 : vector<16x128xf32>
    %cst_14 = arith.constant 0.000000e+00 : f32
    %21 = vector.broadcast %cst_14 : f32 to vector<16x128xf32>
    %22 = arith.maximumf %20, %21 : vector<16x128xf32>
    %23 = arith.truncf %22 : vector<16x128xf32> to vector<16x128xbf16>
    %c0_15 = arith.constant 0 : index
    %c0_16 = arith.constant 0 : index
    %24 = vector.load %arg6[%c0_15, %c0_16] : memref<128x128xbf16, #tpu.memory_space<vmem>>, vector<128x128xbf16>
    %cst_17 = arith.constant dense<0.000000e+00> : vector<16x128xf32>
    %25 = tpu.matmul %23, %24, %cst_17 {dimension_numbers = #tpu.dot_dimension_numbers<[1], [0], [0], [1], [0, 0, 1, 1], [], []>} : vector<16x128xbf16>, vector<128x128xbf16>, vector<16x128xf32> -> vector<16x128xf32>
    %c0_18 = arith.constant 0 : index
    %c0_19 = arith.constant 0 : index
    %26 = vector.load %arg7[%c0_18, %c0_19] : memref<2x128xf32, #tpu.memory_space<vmem>>, vector<1x128xf32>
    %c1_20 = arith.constant 1 : index
    %c0_21 = arith.constant 0 : index
    %27 = vector.load %arg7[%c1_20, %c0_21] : memref<2x128xf32, #tpu.memory_space<vmem>>, vector<1x128xf32>
    %28 = vector.broadcast %26 : vector<1x128xf32> to vector<16x128xf32>
    %29 = arith.mulf %25, %28 : vector<16x128xf32>
    %30 = vector.broadcast %27 : vector<1x128xf32> to vector<16x128xf32>
    %31 = arith.addf %29, %30 : vector<16x128xf32>
    %c0_22 = arith.constant 0 : index
    %c0_23 = arith.constant 0 : index
    %32 = vector.load %arg8[%c0_22, %c0_23] : memref<16x128xf32, #tpu.memory_space<vmem>>, vector<16x128xf32>
    tpu.vector_store %arg8[%c0_22, %c0_23], %31 {strides = array<i32>} : memref<16x128xf32, #tpu.memory_space<vmem>>, vector<16x128xf32>,
    return
  }
  func.func @transform_0(%arg0: i32) -> (i32, i32) {
    %c0_i32 = arith.constant 0 : i32
    %c0_i32_0 = arith.constant 0 : i32
    return %arg0, %c0_i32 : i32, i32
  }
  func.func @transform_1(%arg0: i32) -> (i32, i32) {
    %c0_i32 = arith.constant 0 : i32
    %c0_i32_0 = arith.constant 0 : i32
    %c0_i32_1 = arith.constant 0 : i32
    return %c0_i32, %c0_i32_0 : i32, i32
  }
  func.func @transform_2(%arg0: i32) -> (i32, i32) {
    %c0_i32 = arith.constant 0 : i32
    %c0_i32_0 = arith.constant 0 : i32
    %c0_i32_1 = arith.constant 0 : i32
    return %c0_i32, %c0_i32_0 : i32, i32
  }
  func.func @transform_3(%arg0: i32) -> (i32, i32) {
    %c0_i32 = arith.constant 0 : i32
    %c0_i32_0 = arith.constant 0 : i32
    %c0_i32_1 = arith.constant 0 : i32
    return %c0_i32, %c0_i32_0 : i32, i32
  }
  func.func @transform_4(%arg0: i32) -> (i32, i32) {
    %c0_i32 = arith.constant 0 : i32
    %c0_i32_0 = arith.constant 0 : i32
    %c0_i32_1 = arith.constant 0 : i32
    return %c0_i32, %c0_i32_0 : i32, i32
  }
  func.func @transform_5(%arg0: i32) -> (i32, i32) {
    %c0_i32 = arith.constant 0 : i32
    %c0_i32_0 = arith.constant 0 : i32
    %c0_i32_1 = arith.constant 0 : i32
    return %c0_i32, %c0_i32_0 : i32, i32
  }
  func.func @transform_6(%arg0: i32) -> (i32, i32) {
    %c0_i32 = arith.constant 0 : i32
    %c0_i32_0 = arith.constant 0 : i32
    %c0_i32_1 = arith.constant 0 : i32
    return %c0_i32, %c0_i32_0 : i32, i32
  }
  func.func @transform_7(%arg0: i32) -> (i32, i32) {
    %c0_i32 = arith.constant 0 : i32
    %c0_i32_0 = arith.constant 0 : i32
    return %arg0, %c0_i32 : i32, i32
  }
}

</mosaic_0001>

<bundles_post_ra>
// kernel: tpu_custom_call.1
= control target key start
LH: loop header
LB: loop body
LE: loop exit
PB: predicated region body
PF: predicated region fallthrough
CT: control target
= control target key end

     0   :  { %12 = vsyncpa [#allocation3], 0  ;;  %s776_s0 = inlined_call_operand.hbm [shape: f32[16,128], index: 0, kind: input, shape index: {}]   ;;  %s777_s1 = inlined_call_operand.hbm [shape: bf16[128,128], index: 1, kind: input, shape index: {}]   ;;  %s778_s2 = inlined_call_operand.hbm [shape: f32[2,128], index: 2, kind: input, shape index: {}]   ;;  %s779_s3 = inlined_call_operand.hbm [shape: bf16[128,128], index: 3, kind: input, shape index: {}]   ;;  %s780_s4 = inlined_call_operand.vmem [shape: f32[2,128], index: 4, kind: input, shape index: {}]   ;;  %s781_s5 = inlined_call_operand.hbm [shape: bf16[128,128], index: 5, kind: input, shape index: {}]   ;;  %s782_s6 = inlined_call_operand.vmem [shape: f32[2,128], index: 6, kind: input, shape index: {}]   ;;  %s783_s7 = inlined_call_operand.hbm [shape: f32[16,128], index: 7, kind: output, shape index: {}]  }
   0x1   :  { %13 = vsyncpa [#allocation6], 0 }
   0x2   :  { %14 = vsyncpa [#allocation9], 0  ;;  %s33_s26 = sshll.u32 %s777_s1, 4  ;;  %s34_s26 = int_to_ptr.hbm [resolvable:$true] %s33_s26 }
   0x3   :  { %15 = vsyncpa [#allocation4], 0  ;;  %s681_s27 = smov [#allocation5]   ;;  %s57_s8 = sshll.u32 %s779_s3, 4  ;;  %s58_s8 = int_to_ptr.hbm [resolvable:$true] %s57_s8 }
   0x4   :  { %s35_s28 = sshll.u32 %s681_s27, 4  ;;  %s682_s9 = smov 64   ;;  %s36_s28 = int_to_ptr.vmem [resolvable:$true] %s35_s28 }
   0x5   :  { %s683_s10 = smov 4   ;;  %s684_s11 = smov [#allocation8]  }
   0x6   :  { %41 = dma.hbm_to_vmem [thread:$0]  %s34_s26, 1024, %s36_s28, [#allocation6], %s682_s9, %s682_s9, %s683_s10  }
   0x7   :  { %s59_s12 = sshll.u32 %s684_s11, 4  ;;  %s20_s14 = sshll.u32 %s776_s0, 4  ;;  %s60_s12 = int_to_ptr.vmem [resolvable:$true] %s59_s12  ;;  %s21_s14 = int_to_ptr.hbm [resolvable:$true] %s20_s14 }
   0x8   :  { %65 = dma.hbm_to_vmem [thread:$0]  %s58_s8, 1024, %s60_s12, [#allocation9], %s682_s9, %s682_s9, %s683_s10  }
   0x9   :  { %s685_s3 = smov [#allocation2]   ;;  %s47_s18 = sshll.u32 %s778_s2, 4  ;;  %s48_s18 = int_to_ptr.hbm [resolvable:$true] %s47_s18 }
   0xa   :  { %s22_s15 = sshll.u32 %s685_s3, 4  ;;  %s686_s19 = smov 128   ;;  %s23_s15 = int_to_ptr.vmem [resolvable:$true] %s22_s15 }
   0xb   :  { %s687_s20 = smov 8   ;;  %s688_s0 = smov [#allocation7]  }
   0xc   :  { %28 = dma.hbm_to_vmem [thread:$0]  %s21_s14, 256, %s23_s15, [#allocation3], %s686_s19, %s686_s19, %s687_s20  }
   0xd   :  { %s49_s21 = sshll.u32 %s688_s0, 4  ;;  %s72_s24 = sshll.u32 %s781_s5, 4  ;;  %s50_s21 = int_to_ptr.vmem [resolvable:$true] %s49_s21  ;;  %s73_s24 = int_to_ptr.hbm [resolvable:$true] %s72_s24 }
   0xe   :  { %52 = dma.hbm_to_vmem [thread:$0]  %s48_s18, 32, %s50_s21, [#allocation6]  }
   0xf   :  { %s689_s25 = smov [#allocation10]  }
  0x10   :  { %s74_s26 = sshll.u32 %s689_s25, 4  ;;  %s75_s26 = int_to_ptr.vmem [resolvable:$true] %s74_s26 }
  0x11   :  { %80 = dma.hbm_to_vmem [thread:$0]  %s73_s24, 1024, %s75_s26, [#allocation9], %s682_s9, %s682_s9, %s683_s10  }
  0x12   :  { %673 = dma.done.wait [#allocation3], 256  }
  0x13   :  { %674 = vsyncadd [#allocation3], 4294967040 }
  0x14   :  { %675 = dma.done.wait [#allocation6], 1056  }
  0x15   :  { %676 = vsyncadd [#allocation6], 4294966240 }
  0x16   :  { %677 = dma.done.wait [#allocation9], 2048  }
  0x17   :  { %678 = vsyncadd [#allocation9], 4294965248  ;;  %v496_v0 = vld [vmem:[#allocation5 + $0x38] sm:$0xff]  ;;  %v495_v1 = vld [vmem:[#allocation5 + $0x30] sm:$0xff]  ;;  %s378_s13 = sshll.u32 %s783_s7, 4  ;;  %s379_s13 = int_to_ptr.hbm [resolvable:$true] %s378_s13 }
  0x18   :  { %170 = vmatpush.bf16.msra.mxu0 %v496_v0  ;;  %v504_v2 = vld [vmem:[#allocation8 + $0x38] sm:$0xff]  ;;  %v503_v3 = vld [vmem:[#allocation8 + $0x30] sm:$0xff]  ;;  %v494_v4 = vld [vmem:[#allocation5 + $0x28] sm:$0xff] }
  0x19   :  { %259 = vmatpush.bf16.msra.mxu1 %v504_v2  ;;  %v502_v5 = vld [vmem:[#allocation8 + $0x28] sm:$0xff]  ;;  %v493_v6 = vld [vmem:[#allocation5 + $0x20] sm:$0xff]  ;;  %v492_v8 = vld [vmem:[#allocation5 + $0x18] sm:$0xff] }
  0x1a   :  { %v501_v7 = vld [vmem:[#allocation8 + $0x20] sm:$0xff]  ;;  %v491_v9 = vld [vmem:[#allocation5 + $0x10] sm:$0xff]  ;;  %v104_v13 = vld [vmem:[#allocation2 + $0x8] sm:$0xff] }
  0x1b   :  { %v490_v10 = vld [vmem:[#allocation5 + $0x8] sm:$0xff]  ;;  %v489_v11 = vld [vmem:[#allocation5] sm:$0xff]  ;;  %v103_v12 = vld [vmem:[#allocation2] sm:$0xff] }
  0x1c   :  { %171 = vmatpush.bf16.msra.mxu0 %v495_v1  ;;  %v105_v14 = vpack.c.bf16 %v104_v13, %v103_v12  ;;  %v500_v15 = vld [vmem:[#allocation8 + $0x18] sm:$0xff]  ;;  %v499_v16 = vld [vmem:[#allocation8 + $0x10] sm:$0xff]  ;;  %v498_v17 = vld [vmem:[#allocation8 + $0x8] sm:$0xff] }
  0x1d   :  { %260 = vmatpush.bf16.msra.mxu1 %v503_v3  ;;  %v497_v18 = vld [vmem:[#allocation8] sm:$0xff]  ;;  %v512_v19 = vld [vmem:[#allocation10 + $0x38] sm:$0xff]  ;;  %v511_v20 = vld [vmem:[#allocation10 + $0x30] sm:$0xff] }
  0x1e   :  { %348 = vmatpush.bf16.msra.mxu2 %v512_v19  ;;  %v510_v21 = vld [vmem:[#allocation10 + $0x28] sm:$0xff]  ;;  %v509_v22 = vld [vmem:[#allocation10 + $0x20] sm:$0xff]  ;;  %v523_v24 = vld [vmem:[#allocation7] ss:$0 sm:$0xff] }
  0x1f   :  { %v524_v26 = vld [vmem:[#allocation7 + $0x1] ss:$0 sm:$0xff]  ;;  %v507_v35 = vld [vmem:[#allocation10 + $0x10] sm:$0xff]  ;;  %v506_v36 = vld [vmem:[#allocation10 + $0x8] sm:$0xff] }
  0x20   :  { %172 = vmatpush.bf16.msra.mxu0 %v494_v4  ;;  %v508_v34 = vld [vmem:[#allocation10 + $0x18] sm:$0xff]  ;;  %v505_v37 = vld [vmem:[#allocation10] sm:$0xff]  ;;  %v525_v39 = vld [vmem:[%s780_s4] ss:$0 sm:$0xff] }
  0x21   :  { %261 = vmatpush.bf16.msra.mxu1 %v502_v5  ;;  %v526_v41 = vld [vmem:[%s780_s4 + $0x1] ss:$0 sm:$0xff]  ;;  %v527_v49 = vld [vmem:[%s782_s6] ss:$0 sm:$0xff]  ;;  %s690_s4 = smov [#allocation11]  }
  0x22   :  { %349 = vmatpush.bf16.msra.mxu2 %v511_v20  ;;  %v528_v50 = vld [vmem:[%s782_s6 + $0x1] ss:$0 sm:$0xff]  ;;  %s376_s10 = sshll.u32 %s690_s4, 4  ;;  %s377_s10 = int_to_ptr.vmem [resolvable:$true] %s376_s10 }
  0x24   :  { %173 = vmatpush.bf16.msra.mxu0 %v493_v6 }
  0x25   :  { %262 = vmatpush.bf16.msra.mxu1 %v501_v7 }
  0x26   :  { %350 = vmatpush.bf16.msra.mxu2 %v510_v21 }
  0x28   :  { %174 = vmatpush.bf16.msra.mxu0 %v492_v8 }
  0x29   :  { %263 = vmatpush.bf16.msra.mxu1 %v500_v15 }
  0x2a   :  { %351 = vmatpush.bf16.msra.mxu2 %v509_v22 }
  0x2c   :  { %175 = vmatpush.bf16.msra.mxu0 %v491_v9 }
  0x2d   :  { %264 = vmatpush.bf16.msra.mxu1 %v499_v16 }
  0x2e   :  { %352 = vmatpush.bf16.msra.mxu2 %v508_v34 }
  0x30   :  { %176 = vmatpush.bf16.msra.mxu0 %v490_v10 }
  0x31   :  { %265 = vmatpush.bf16.msra.mxu1 %v498_v17 }
  0x32   :  { %353 = vmatpush.bf16.msra.mxu2 %v507_v35 }
  0x34   :  { %177 = vmatpush.bf16.msra.mxu0 %v489_v11 }
  0x35   :  { %266 = vmatpush.bf16.msra.mxu1 %v497_v18 }
  0x36   :  { %354 = vmatpush.bf16.msra.mxu2 %v506_v36 }
  0x37   :  { %178 = vmatmul.bf16.vlgmr.msra.gmra.mxu0 %v105_v14 }
  0x3a   :  { %355 = vmatpush.bf16.msra.mxu2 %v505_v37 }
  0xb4   :  { %v179_v23 = vpop.f32.mrf.mxu0 }
  0xb5   :  { %v187_v25 = vmul.f32 %v523_v24, %v179_v23 }
  0xb7   :  { %v190_v28 = vadd.f32 %v524_v26, %v187_v25 }
  0xb9   :  { %v192_v31 = vmax.f32 %v190_v28, 0.0 }
  0xbc   :  { %v181_v27 = vpop.f32.mrf.mxu0 }
  0xbd   :  { %v188_v29 = vmul.f32 %v523_v24, %v181_v27 }
  0xbf   :  { %v191_v30 = vadd.f32 %v524_v26, %v188_v29 }
  0xc1   :  { %v193_v32 = vmax.f32 %v191_v30, 0.0 }
  0xc3   :  { %v194_v33 = vpack.c.bf16 %v193_v32, %v192_v31 }
  0xc5   :  { %267 = vmatmul.bf16.vlgmr.msra.gmra.mxu1 %v194_v33 }
 0x142   :  { %v268_v38 = vpop.f32.mrf.mxu1 }
 0x143   :  { %v276_v40 = vmul.f32 %v525_v39, %v268_v38 }
 0x145   :  { %v279_v43 = vadd.f32 %v526_v41, %v276_v40 }
 0x147   :  { %v281_v46 = vmax.f32 %v279_v43, 0.0 }
 0x14a   :  { %v270_v42 = vpop.f32.mrf.mxu1 }
 0x14b   :  { %v277_v44 = vmul.f32 %v525_v39, %v270_v42 }
 0x14d   :  { %v280_v45 = vadd.f32 %v526_v41, %v277_v44 }
 0x14f   :  { %v282_v47 = vmax.f32 %v280_v45, 0.0 }
 0x151   :  { %v283_v48 = vpack.c.bf16 %v282_v47, %v281_v46 }
 0x153   :  { %356 = vmatmul.bf16.vlgmr.msra.gmra.mxu2 %v283_v48 }
 0x1d6   :  { %v357_v51 = vpop.f32.mrf.mxu2 }
 0x1d7   :  { %v365_v52 = vmul.f32 %v527_v49, %v357_v51 }
 0x1d9   :  { %v368_v53 = vadd.f32 %v528_v50, %v365_v52 }
 0x1db   :  { %370 = vst [vmem:[#allocation11] sm:$0xff] %v368_v53 }
 0x1de   :  { %v359_v54 = vpop.f32.mrf.mxu2 }
 0x1df   :  { %v366_v55 = vmul.f32 %v527_v49, %v359_v54 }
 0x1e1   :  { %v369_v56 = vadd.f32 %v528_v50, %v366_v55 }
 0x1e3   :  { %371 = vst [vmem:[#allocation11 + $0x8] sm:$0xff] %v369_v56 }
 0x1e4   :  { %384 = dma.vmem_to_hbm [thread:$0]  %s377_s10, 256, %s379_s13, [#allocation4], %s686_s19, %s686_s19, %s687_s20  }
 0x1e5   :  { %679 = dma.done.wait [#allocation4], 256  }
 0x1e6   :  { %680 = vsyncadd [#allocation4], 4294967040 }
 0x1e7   :  { %389 = vsyncpa [#allocation3], 1 }
 0x1e8   :  { %390 = vsyncpa [#allocation6], 1 }
 0x1e9   :  { %391 = vsyncpa [#allocation9], 1 }
 0x1ea   :  { %392 = vsyncpa [#allocation4], 1 }

</bundles_post_ra>
